<compile_context>
chip_gen: v5e
topology: v5e:2x2
jax: 0.10.0
libtpu: 0.0.40
codegen_flags: <defaults>
</compile_context>

<pallas_src>
import jax
import jax.numpy as jnp
from jax import lax
from jax.experimental import pallas as pl
from jax.experimental.pallas import tpu as pltpu


def attention_pooling_kernel(h_ref, w_ref, m_ref, o_ref):
    """One grid step == one block of BT batch rows.

    h_ref : [BT, S, H]  hidden_states block
    w_ref : [1, H]      attn_proj weight (float32, resident across the grid)
    m_ref : [BT, S]     attention mask block (int32, 0 == masked)
    o_ref : [BT, H]     pooled output block
    """
    bt = h_ref.shape[0]
    w = w_ref[...]                                     # [1, H] float32

    def body(r, carry):
        h_row = h_ref[r]                               # [S, H] (dynamic row of the block)
        hs = h_row if h_row.dtype == w.dtype else h_row.astype(w.dtype)

        # scores[1, S] = w @ h_row^T   (the Linear(H, 1) projection; bias is
        # omitted on purpose: softmax is shift-invariant, so it is a no-op).
        scores = lax.dot_general(
            w, hs,
            dimension_numbers=(((1,), (1,)), ((), ())),
            preferred_element_type=jnp.float32,
        )                                              # [1, S]

        # masked_fill(mask == 0, -1e9)
        m_row = m_ref[pl.ds(r, 1), :]                  # [1, S] int32
        scores = jnp.where(m_row == 0, jnp.float32(-1.0e9), scores)

        # softmax over the sequence (lane) axis
        mx = jnp.max(scores, axis=-1, keepdims=True)   # [1, 1]
        e = jnp.exp(scores - mx)                       # [1, S]
        denom = jnp.sum(e, axis=-1, keepdims=True)     # [1, 1]
        inv = pl.reciprocal(denom, approx=True)        # EUP slot (idle in this kernel)
        inv = inv * (2.0 - denom * inv)                # one Newton step -> f32 accuracy
        attn = e * inv                                 # [1, S] float32

        # pooled[1, H] = attn @ h_row   (natural MXU orientation, no transpose)
        attn_c = attn if attn.dtype == h_row.dtype else attn.astype(h_row.dtype)
        pooled = jnp.dot(attn_c, h_row, preferred_element_type=jnp.float32)
        o_ref[pl.ds(r, 1), :] = pooled.astype(o_ref.dtype)
        return carry

    lax.fori_loop(0, bt, body, 0)


def attention_pooling(hidden_states, weight, bias=None, attention_mask=None,
                      *, block_bytes=4 * 1024 * 1024):
    """pooled[b, :] = sum_s softmax(mask(W @ h[b, s, :]))_s * h[b, s, :]."""
    B, S, H = hidden_states.shape
    dtype = hidden_states.dtype

    if attention_mask is None:
        attention_mask = jnp.ones((B, S), dtype=jnp.int32)
    attention_mask = attention_mask.astype(jnp.int32)

    # Keep the nn.Linear weight in float32 (do not quantize it to the
    # activation dtype).  The bias is a no-op through the softmax -> not sent
    # to the kernel at all.
    w = jnp.asarray(weight, dtype=jnp.float32).reshape(1, H)
    del bias

    # ---- choose a batch block so the hidden_states tile is ~MiB scale -------
    row_bytes = S * H * dtype.itemsize
    bt = max(1, block_bytes // max(1, row_bytes))
    if bt >= B:
        BT = B                              # whole batch in one block (full dims)
    else:
        BT = max(8, (bt // 8) * 8)          # keep (BT,S)/(BT,H) blocks sublane-aligned
    n_blocks = -(-B // BT)                  # ceil div
    B_pad = n_blocks * BT
    if B_pad != B:
        pad = B_pad - B                     # padded rows: zero hidden, zero mask ->
        hidden_states = jnp.pad(hidden_states, ((0, pad), (0, 0), (0, 0)))
        attention_mask = jnp.pad(attention_mask, ((0, pad), (0, 0)))   # output 0, sliced off

    out = pl.pallas_call(
        attention_pooling_kernel,
        out_shape=jax.ShapeDtypeStruct((B_pad, H), dtype),
        grid=(n_blocks,),
        in_specs=[
            pl.BlockSpec((BT, S, H), lambda i: (i, 0, 0)),   # hidden_states block
            pl.BlockSpec((1, H), lambda i: (0, 0)),          # weight (shared, fetched once)
            pl.BlockSpec((BT, S), lambda i: (i, 0)),         # attention_mask block
        ],
        out_specs=pl.BlockSpec((BT, H), lambda i: (i, 0)),
        compiler_params=pltpu.CompilerParams(
            dimension_semantics=("parallel",)),
    )(hidden_states, w, attention_mask)

    return out[:B] if B_pad != B else out


def attention_pooling_ref(hidden_states, weight, bias, attention_mask=None):
    # Pure-JAX reference mirroring the PyTorch forward.
    scores = jnp.einsum("bsh,h->bs", hidden_states, weight.reshape(-1)) + bias.reshape(())
    if attention_mask is not None:
        scores = jnp.where(attention_mask == 0, -1.0e9, scores)
    attn = jax.nn.softmax(scores, axis=1)
    return jnp.sum(hidden_states * attn[..., None], axis=1)


if __name__ == "__main__":
    B, S, H = 2, 8, 32

    key = jax.random.PRNGKey(0)
    k_h, k_w, k_b, k_h2, k_m = jax.random.split(key, 5)

    hidden_states = jax.random.normal(k_h, (B, S, H), dtype=jnp.float32)
    # nn.Linear(hidden_dim, 1): weight (1, H), bias (1,).
    weight = jax.random.normal(k_w, (1, H), dtype=jnp.float32) * 0.1
    bias = jax.random.normal(k_b, (1,), dtype=jnp.float32) * 0.1

    attention_mask = jnp.ones((B, S), dtype=jnp.int32)
    attention_mask = attention_mask.at[1, 6:].set(0)   # mask last two tokens of batch 1

    out = attention_pooling(hidden_states, weight, bias, attention_mask)
    out = jax.block_until_ready(out)
    ref = attention_pooling_ref(hidden_states, weight, bias, attention_mask)
    assert out.shape == (B, H)
    assert jnp.allclose(out, ref, atol=1e-4, rtol=1e-4), (out, ref)

    # Exercise the multi-block grid + padded-batch path (BT=8, 2 blocks, B padded 9->16).
    B2 = 9
    hidden2 = jax.random.normal(k_h2, (B2, S, H), dtype=jnp.float32)
    mask2 = (jax.random.uniform(k_m, (B2, S)) > 0.3).astype(jnp.int32)
    mask2 = mask2.at[:, 0].set(1)                       # keep >=1 live token per row
    out2 = attention_pooling(hidden2, weight, bias, mask2, block_bytes=8 * 1024)
    out2 = jax.block_until_ready(out2)
    ref2 = attention_pooling_ref(hidden2, weight, bias, mask2)
    assert out2.shape == (B2, H)
    assert jnp.allclose(out2, ref2, atol=1e-4, rtol=1e-4), (out2, ref2)

    print("KERNEL_OK")
</pallas_src>

<mosaic_0001>
module attributes {stable_mosaic.version = 11 : i64} {
  func.func @attention_pooling_kernel(%arg0: i32, %arg1: memref<2x8x32xf32, #tpu.memory_space<vmem>>, %arg2: memref<1x32xf32, #tpu.memory_space<vmem>>, %arg3: memref<2x8xi32, #tpu.memory_space<vmem>>, %arg4: memref<2x32xf32, #tpu.memory_space<vmem>>) attributes {dimension_semantics = [#tpu.dimension_semantics<parallel>], iteration_bounds = array<i64: 1>, scalar_prefetch = 0 : i64, scratch_operands = 0 : i64, tpu.core_type = #tpu.core_type<tc>, window_params = [{transform_indices = @transform_0, window_bounds = array<i64: 2, 8, 32>}, {pipeline_mode = #tpu.pipeline_mode<synchronous>, transform_indices = @transform_1, window_bounds = array<i64: 1, 32>}, {transform_indices = @transform_2, window_bounds = array<i64: 2, 8>}, {transform_indices = @transform_3, window_bounds = array<i64: 2, 32>}]} {
    %c0 = arith.constant 0 : index
    %c0_0 = arith.constant 0 : index
    %0 = vector.load %arg2[%c0, %c0_0] : memref<1x32xf32, #tpu.memory_space<vmem>>, vector<1x32xf32>
    %c0_i32 = arith.constant 0 : i32
    %c2_i32 = arith.constant 2 : i32
    %1 = arith.addi %c0_i32, %c2_i32 : i32
    %c1_i32 = arith.constant 1 : i32
    scf.for %arg5 = %c0_i32 to %1 step %c1_i32  : i32 {
      %2 = arith.index_cast %arg5 : i32 to index
      %c0_2 = arith.constant 0 : index
      %c0_3 = arith.constant 0 : index
      %3 = vector.load %arg1[%2, %c0_2, %c0_3] : memref<2x8x32xf32, #tpu.memory_space<vmem>>, vector<1x8x32xf32>
      %4 = vector.shape_cast %3 : vector<1x8x32xf32> to vector<8x32xf32>
      %cst = arith.constant dense<0.000000e+00> : vector<1x8xf32>
      %5 = tpu.matmul %0, %4, %cst {dimension_numbers = #tpu.dot_dimension_numbers<[1], [1], [0], [0], [0, 0, 1, 0], [], []>} : vector<1x32xf32>, vector<8x32xf32>, vector<1x8xf32> -> vector<1x8xf32>
      %6 = arith.index_cast %arg5 : i32 to index
      %c0_4 = arith.constant 0 : index
      %7 = vector.load %arg3[%6, %c0_4] : memref<2x8xi32, #tpu.memory_space<vmem>>, vector<1x8xi32>
      %c0_i32_5 = arith.constant 0 : i32
      %8 = vector.broadcast %c0_i32_5 : i32 to vector<1x8xi32>
      %9 = arith.cmpi eq, %7, %8 : vector<1x8xi32>
      %cst_6 = arith.constant -1.000000e+09 : f32
      %10 = vector.broadcast %cst_6 : f32 to vector<1x8xf32>
      %11 = arith.select %9, %10, %5 : vector<1x8xi1>, vector<1x8xf32>
      %cst_7 = arith.constant dense<0xFF800000> : vector<1xf32>
      %12 = vector.multi_reduction <maximumf>, %11, %cst_7 [1] : vector<1x8xf32> to vector<1xf32>
      %13 = vector.shape_cast %12 : vector<1xf32> to vector<1x1xf32>
      %14 = vector.broadcast %13 : vector<1x1xf32> to vector<1x8xf32>
      %15 = arith.subf %11, %14 : vector<1x8xf32>
      %16 = math.exp %15 : vector<1x8xf32>
      %cst_8 = arith.constant dense<0.000000e+00> : vector<1xf32>
      %17 = vector.multi_reduction <add>, %16, %cst_8 [1] : vector<1x8xf32> to vector<1xf32>
      %18 = vector.shape_cast %17 : vector<1xf32> to vector<1x1xf32>
      %19 = tpu.reciprocal %18 {approx = true} : vector<1x1xf32> -> vector<1x1xf32>
      %20 = arith.mulf %18, %19 : vector<1x1xf32>
      %cst_9 = arith.constant 2.000000e+00 : f32
      %21 = vector.broadcast %cst_9 : f32 to vector<1x1xf32>
      %22 = arith.subf %21, %20 : vector<1x1xf32>
      %23 = arith.mulf %19, %22 : vector<1x1xf32>
      %24 = vector.broadcast %23 : vector<1x1xf32> to vector<1x8xf32>
      %25 = arith.mulf %16, %24 : vector<1x8xf32>
      %cst_10 = arith.constant dense<0.000000e+00> : vector<1x32xf32>
      %26 = tpu.matmul %25, %4, %cst_10 {dimension_numbers = #tpu.dot_dimension_numbers<[1], [0], [0], [1], [0, 0, 1, 1], [], []>} : vector<1x8xf32>, vector<8x32xf32>, vector<1x32xf32> -> vector<1x32xf32>
      %27 = arith.index_cast %arg5 : i32 to index
      %c0_11 = arith.constant 0 : index
      %28 = vector.load %arg4[%27, %c0_11] : memref<2x32xf32, #tpu.memory_space<vmem>>, vector<1x32xf32>
      tpu.vector_store %arg4[%27, %c0_11], %26 {strides = array<i32>} : memref<2x32xf32, #tpu.memory_space<vmem>>, vector<1x32xf32>,
    }
    %c2_i32_1 = arith.constant 2 : i32
    return
  }
  func.func @transform_0(%arg0: i32) -> (i32, i32, i32) {
    %c0_i32 = arith.constant 0 : i32
    %c0_i32_0 = arith.constant 0 : i32
    %c0_i32_1 = arith.constant 0 : i32
    return %arg0, %c0_i32, %c0_i32_0 : i32, i32, i32
  }
  func.func @transform_1(%arg0: i32) -> (i32, i32) {
    %c0_i32 = arith.constant 0 : i32
    %c0_i32_0 = arith.constant 0 : i32
    %c0_i32_1 = arith.constant 0 : i32
    return %c0_i32, %c0_i32_0 : i32, i32
  }
  func.func @transform_2(%arg0: i32) -> (i32, i32) {
    %c0_i32 = arith.constant 0 : i32
    %c0_i32_0 = arith.constant 0 : i32
    return %arg0, %c0_i32 : i32, i32
  }
  func.func @transform_3(%arg0: i32) -> (i32, i32) {
    %c0_i32 = arith.constant 0 : i32
    %c0_i32_0 = arith.constant 0 : i32
    return %arg0, %c0_i32 : i32, i32
  }
}

</mosaic_0001>

<bundles_post_ra>
// kernel: tpu_custom_call.1
= control target key start
LH: loop header
LB: loop body
LE: loop exit
PB: predicated region body
PF: predicated region fallthrough
CT: control target
= control target key end

     0   :  { %8 = vsyncpa [#allocation3], 0  ;;  %s349_s0 = inlined_call_operand.hbm [shape: f32[2,8,32], index: 0, kind: input, shape index: {}]   ;;  %s350_s1 = inlined_call_operand.hbm [shape: f32[1,32], index: 1, kind: input, shape index: {}]   ;;  %s351_s2 = inlined_call_operand.hbm [shape: s32[2,8], index: 2, kind: input, shape index: {}]   ;;  %s352_s3 = inlined_call_operand.hbm [shape: f32[2,32], index: 3, kind: output, shape index: {}]  }
   0x1   :  { %9 = vsyncpa [#allocation6], 0  ;;  %s29_s14 = sshll.u32 %s350_s1, 4  ;;  %s30_s14 = int_to_ptr.hbm [resolvable:$true] %s29_s14 }
   0x2   :  { %10 = vsyncpa [#allocation4], 0  ;;  %s300_s15 = smov [#allocation5]   ;;  %s15_s19 = sshll.u32 %s349_s0, 4  ;;  %s16_s19 = int_to_ptr.hbm [resolvable:$true] %s15_s19 }
   0x3   :  { %s31_s16 = sshll.u32 %s300_s15, 4  ;;  %s301_s20 = smov [#allocation2]   ;;  %s32_s16 = int_to_ptr.vmem [resolvable:$true] %s31_s16 }
   0x4   :  { %34 = dma.hbm_to_vmem [thread:$0]  %s30_s14, 16, %s32_s16, [#allocation6]  }
   0x5   :  { %s17_s21 = sshll.u32 %s301_s20, 4  ;;  %s302_s22 = smov 128   ;;  %s18_s21 = int_to_ptr.vmem [resolvable:$true] %s17_s21 }
   0x6   :  { %s303_s23 = smov 8   ;;  %s40_s1 = sshll.u32 %s351_s2, 4  ;;  %s41_s1 = int_to_ptr.hbm [resolvable:$true] %s40_s1 }
   0x7   :  { %23 = dma.hbm_to_vmem [thread:$0]  %s16_s19, 256, %s18_s21, [#allocation3], %s302_s22, %s302_s22, %s303_s23  }
   0x8   :  { %s304_s26 = smov [#allocation7]  }
   0x9   :  { %s42_s27 = sshll.u32 %s304_s26, 4  ;;  %s43_s27 = int_to_ptr.vmem [resolvable:$true] %s42_s27 }
   0xa   :  { %45 = dma.hbm_to_vmem [thread:$0]  %s41_s1, 32, %s43_s27, [#allocation6]  }
   0xb   :  { %290 = dma.done.wait [#allocation3], 256  }
   0xc   :  { %291 = vsyncadd [#allocation3], 4294967040 }
   0xd   :  { %292 = dma.done.wait [#allocation6], 48  }
   0xe   :  { %293 = vsyncadd [#allocation6], 4294967248  ;;  %v58_v0 = vld [vmem:[#allocation5] sm:$0x1]  ;;  %s335_s0 = smov 0  }
   0xf LB: > { %s168_s2 = sshll.u32 %s298_s0, 3  ;;  %vm68_vm0 = vcmask 261120   ;;  %s95_s29 = scalar_lea.vmem [#allocation7], %s298_s0  ;;  %vm99_vm2 = vcmask 57344   ;;  %vm114_vm3 = vcmask 64512   ;;  %vm139_vm4 = vcmask 253952   ;;  %s298_s0 = sphi %s335_s0, %s64_s0  }
  0x10   : > { %s66_s28 = scalar_lea.vmem [#allocation2], %s168_s2  ;;  %v96_v2 = vld [vmem:[%s95_s29] sm:$0x1]  ;;  %s138_s30 = scalar_lea.vmem [#allocation8], %s298_s0 }
  0x11   : > { %v67_v1 = vld [vmem:[%s66_s28] sm:$0xff]  ;;  %vm97_vm1 = vcmp.eq.s32.totalorder %v96_v2, 0  ;;  %s64_s0 = sadd.s32 1, %s298_s0  }
  0x12   : > { %169 = vmatpush.xpose.msk.msra.mxu0 %vm68_vm0, %v67_v1  ;;  %133 = vmatpush.msra.mxu1 %v67_v1  ;;  %p61_p0 = scmp.ge.s32.totalorder %s64_s0, 2  }
  0x13   :  { %s148_s6 = sshll.u32 (%p61_p0), %s352_s3, 4  ;;  %s305_s7 = smov (%p61_p0), [#allocation8]   ;;  %s149_s6 = int_to_ptr.hbm [resolvable:$true] %s148_s6 }
  0x14   :  { %s146_s8 = sshll.u32 (%p61_p0), %s305_s7, 4  ;;  %s147_s8 = int_to_ptr.vmem [resolvable:$true] %s146_s8 }
  0x15   : > { %170 = vmatmul.msk.f32.vlgmr.msra.gmra.mxu0 %vm68_vm0, %v58_v0 }
  0x92   : > { %v92_v3 = vpop.f32.mrf.mxu0 }
  0x93   : > { %v98_v4 = vsel %vm97_vm1, -1e+09, %v92_v3 }
  0x94   : > { %v100_v5 = vsel %vm99_vm2, %v98_v4, -inf }
  0x95   : > { %101 = vmax.xlane.f32.xlu0 %v100_v5 }
 0x108   : > { %v102_v6 = vpop.xlane.xlu0 %101 }
 0x109   : > { %v103_v7 = vsub.f32 %v98_v4, %v102_v6 }
 0x10b   : > { %v104_v8 = vmul.f32 1.442695, %v103_v7 }
 0x10d   : > { %186 = vpow2.f32 %v104_v8 }
 0x113   : > { %v187_v9 = vpop.eup %186 }
 0x114   : > { %v106_v10 = vsel %vm99_vm2, %v187_v9, 0.0 }
 0x115   : > { %107 = vadd.xlane.f32.xlu0 %v106_v10 }
 0x188   : > { %v108_v11 = vpop.xlane.xlu0 %107 }
 0x189   : > { %188 = vrcp.f32 %v108_v11 }
 0x18f   : > { %v189_v12 = vpop.eup %188 }
 0x190   : > { %v110_v13 = vmul.f32 %v189_v12, %v108_v11 }
 0x192   : > { %v111_v14 = vsub.f32 2.0, %v110_v13 }
 0x194   : > { %v112_v15 = vmul.f32 %v189_v12, %v111_v14 }
 0x196   : > { %v113_v16 = vmul.f32 %v187_v9, %v112_v15 }
 0x198   : > { %171 = vmatmul.msk.f32.vlgmr.msra.gmra.mxu1 %vm114_vm3, %v113_v16 }
 0x212   :  { %63 = sbr.rel (!%p61_p0) target bundleno = 15 (0xf), region = 54 }
 0x215   : > { %v135_v17 = vpop.f32.mrf.mxu1 }
 0x216   : > { %140 = vst.msk [vmem:[%s138_s30] sm:$0x1] %vm139_vm4, %v135_v17 }
 0x217   :  { %151 = dma.vmem_to_hbm [thread:$0]  %s147_s8, 32, %s149_s6, [#allocation4]  }
 0x218   :  { %294 = dma.done.wait [#allocation4], 32  }
 0x219   :  { %295 = vsyncadd [#allocation4], 4294967264 }
 0x21a   :  { %156 = vsyncpa [#allocation3], 1 }
 0x21b   :  { %157 = vsyncpa [#allocation6], 1 }
 0x21c   :  { %158 = vsyncpa [#allocation4], 1 }

</bundles_post_ra>
